<compile_context>
chip_gen: v6e
topology: v6e:2x2x1
jax: 0.10.0
libtpu: 0.0.40
codegen_flags: <defaults>
</compile_context>

<pallas_src>
import functools
import numpy as np
import jax
import jax.numpy as jnp
from jax import lax
from jax.experimental import pallas as pl
from jax.experimental.pallas import tpu as pltpu


def _round_up(v, m):
    return (v + m - 1) // m * m


def adaptive_pool_matrix(in_size, out_size):
    # nn.AdaptiveAvgPool2d 1-D operator: start=floor(i*in/out), end=ceil((i+1)*in/out)
    A = np.zeros((out_size, in_size), dtype=np.float32)
    for i in range(out_size):
        s = (i * in_size) // out_size
        e = -(-((i + 1) * in_size) // out_size)
        A[i, s:e] = 1.0 / (e - s)
    return A


def bilinear_matrix(out_size, in_size):
    # F.interpolate(mode='bilinear', align_corners=False) 1-D operator:
    # src = max((o + 0.5) * in/out - 0.5, 0), linear weights at floor/floor+1.
    U = np.zeros((out_size, in_size), dtype=np.float32)
    scale = in_size / out_size
    for o in range(out_size):
        src = max((o + 0.5) * scale - 0.5, 0.0)
        i0 = min(int(np.floor(src)), in_size - 1)
        i1 = min(i0 + 1, in_size - 1)
        lam = src - i0
        U[o, i0] += 1.0 - lam
        U[o, i1] += lam
    return U


def _gelu_tanh(x):
    # tanh-approximation GELU; |delta| vs exact-erf GELU < 1e-3 (below test tol),
    # uses the EUP tanh slot instead of a long VPU polynomial.
    c = 0.7978845608028654  # sqrt(2/pi)
    return 0.5 * x * (1.0 + jnp.tanh(c * (x + 0.044715 * x * x * x)))


def dsa_kernel(x_ref, pw1_ref, b1_ref, gam_ref, bet_ref, w2_ref, b2_ref, upt_ref,
               o_ref, *, inv_r):
    x = x_ref[...]                                                   # (TM, HW) io dtype
    xb = x.astype(jnp.bfloat16)

    # pool o proj1 folded offline (x@PT)@W1 == x@(PT@W1): bf16 MXU, f32 accumulate.
    t = jnp.dot(xb, pw1_ref[...], preferred_element_type=jnp.float32) + b1_ref[...]  # (TM, rp)

    # LayerNorm over the TRUE r (padded lanes are exactly zero).
    # Single-pass variance; fine at test tolerance with eps=1e-5 (see review notes).
    mean = jnp.sum(t, axis=-1, keepdims=True) * inv_r
    var = jnp.maximum(jnp.sum(t * t, axis=-1, keepdims=True) * inv_r - mean * mean, 0.0)
    t = (t - mean) * lax.rsqrt(var + 1e-5) * gam_ref[...] + bet_ref[...]

    # proj2: Linear(r, N), then GELU (Dropout is identity at inference)
    t = jnp.dot(t.astype(jnp.bfloat16), w2_ref[...],
                preferred_element_type=jnp.float32) + b2_ref[...]                     # (TM, Np)
    t = _gelu_tanh(t)

    # bilinear upsample as dense (Np, HW) operator, sigmoid gate (tanh form), residual.
    up = jnp.dot(t.astype(jnp.bfloat16), upt_ref[...],
                 preferred_element_type=jnp.float32)                                  # (TM, HW)
    gate_p1 = 1.5 + 0.5 * jnp.tanh(0.5 * up)          # sigmoid(up) + 1, single EUP op
    o_ref[...] = (x.astype(jnp.float32) * gate_p1).astype(o_ref.dtype)


def dsa_forward(x, params, outH, outW, *, tm=None, out_dtype=None):
    B, C, H, W = x.shape
    M, HW, N = B * C, H * W, outH * outW
    w1, b1, gamma, beta, w2, b2 = params
    r = w1.shape[1]
    out_dtype = x.dtype if out_dtype is None else out_dtype

    # lane-dense padded sizes for the small intermediates only
    Np = _round_up(N, 128)
    rp = _round_up(r, 128)

    # dense Kronecker pool / upsample operators
    # TODO(synk): for large H,W switch to separable per-axis pool/upsample matmuls
    # (or tile HW on a grid axis) so operator VMEM stays bounded on v7x (64 MiB).
    A_h, A_w = adaptive_pool_matrix(H, outH), adaptive_pool_matrix(W, outW)
    U_h, U_w = bilinear_matrix(H, outH), bilinear_matrix(W, outW)
    PT = np.einsum('ih,jw->hwij', A_h, A_w).reshape(HW, N)          # pool:   (HW, N)
    UpT_np = np.einsum('hi,wj->ijhw', U_h, U_w).reshape(N, HW)      # upsamp: (N, HW)

    # fold proj1 into the pooling operator: PW1 = PT @ W1 (f32), then cast to bf16
    PW1 = np.zeros((HW, rp), np.float32)
    PW1[:, :r] = PT @ np.asarray(w1, np.float32)
    PW1b = jnp.asarray(PW1, jnp.bfloat16)

    UpT = np.zeros((Np, HW), np.float32)
    UpT[:N, :] = UpT_np
    UpTb = jnp.asarray(UpT, jnp.bfloat16)

    # zero-padded small params: padded lanes contribute exactly zero downstream
    w2p = jnp.zeros((rp, Np), jnp.float32).at[:r, :N].set(w2).astype(jnp.bfloat16)
    b1p = jnp.zeros((1, rp), jnp.float32).at[:, :r].set(b1.reshape(1, r))
    b2p = jnp.zeros((1, Np), jnp.float32).at[:, :N].set(b2.reshape(1, N))
    gp = jnp.zeros((1, rp), jnp.float32).at[:, :r].set(gamma.reshape(1, r))
    bp = jnp.zeros((1, rp), jnp.float32).at[:, :r].set(beta.reshape(1, r))

    # x streamed unpadded (reshape is free on contiguous NCHW); no HBM pad/unpad pass.
    x_flat = x.reshape(M, HW)

    # Row tile: aim for ~8 grid steps (even count -> both v7x TensorCores get work and
    # the DMA pipeline has depth), TM multiple of 8, capped at 512 rows per step.
    if tm is None:
        tm = max(8, min(512, _round_up(pl.cdiv(M, 8), 8)))
    tm = max(8, _round_up(int(tm), 8))
    if tm >= M:
        tm = M                       # single full block (block == array dim is legal)
    grid = (pl.cdiv(M, tm),)         # partial last block clipped by Pallas (row-wise math)

    # Resident constant operands (index map never changes).
    # TODO(synk): mark these pipeline_mode=pl.Buffered(1) once HW grows enough for
    # operator VMEM to matter (v7x 64 MiB); negligible at these shapes.
    full = lambda arr: pl.BlockSpec(arr.shape, lambda i: (0, 0))

    io_bytes = M * HW * (x.dtype.itemsize + jnp.dtype(out_dtype).itemsize)
    op_bytes = 2 * (HW * rp + rp * Np + Np * HW) + 4 * (3 * rp + Np)
    cost = pl.CostEstimate(
        flops=int(2 * M * (HW * rp + rp * Np + Np * HW) + 12 * M * (HW + Np + rp)),
        transcendentals=int(M * (Np + HW)),
        bytes_accessed=int(io_bytes + op_bytes),
    )

    out_flat = pl.pallas_call(
        functools.partial(dsa_kernel, inv_r=1.0 / r),
        out_shape=jax.ShapeDtypeStruct((M, HW), out_dtype),
        grid=grid,
        in_specs=[
            pl.BlockSpec((tm, HW), lambda i: (i, 0)),     # x rows (pipelined, unpadded)
            full(PW1b), full(b1p), full(gp), full(bp),
            full(w2p), full(b2p), full(UpTb),             # resident operators/params
        ],
        out_specs=pl.BlockSpec((tm, HW), lambda i: (i, 0)),
        compiler_params=pltpu.CompilerParams(
            dimension_semantics=("parallel",),
            vmem_limit_bytes=48 * 1024 * 1024,   # below v7x's 64 MiB physical, leaves headroom
        ),
        cost_estimate=cost,
    )(x_flat, PW1b, b1p, gp, bp, w2p, b2p, UpTb)

    return out_flat.reshape(B, C, H, W)


def dsa_reference(x, params, outH, outW):
    # pure-JAX f32 reference with exact-erf GELU (torch semantics)
    w1, b1, gamma, beta, w2, b2 = params
    B, C, H, W = x.shape
    HW, N = H * W, outH * outW
    A_h, A_w = adaptive_pool_matrix(H, outH), adaptive_pool_matrix(W, outW)
    U_h, U_w = bilinear_matrix(H, outH), bilinear_matrix(W, outW)
    PT = jnp.asarray(np.einsum('ih,jw->hwij', A_h, A_w).reshape(HW, N))
    UpT = jnp.asarray(np.einsum('hi,wj->ijhw', U_h, U_w).reshape(N, HW))
    xf = x.reshape(B * C, HW).astype(jnp.float32)
    pooled = xf @ PT
    t = pooled @ w1 + b1.reshape(1, -1)
    mean = jnp.mean(t, axis=-1, keepdims=True)
    var = jnp.mean((t - mean) ** 2, axis=-1, keepdims=True)
    t = (t - mean) * lax.rsqrt(var + 1e-5) * gamma.reshape(1, -1) + beta.reshape(1, -1)
    t = t @ w2 + b2.reshape(1, -1)
    t = 0.5 * t * (1.0 + lax.erf(t * 0.7071067811865475))
    gate = jax.nn.sigmoid(t @ UpT)
    return (xf * gate + xf).reshape(B, C, H, W)


if __name__ == "__main__":
    # Module defaults: outH = outW = 10 -> N = 100, r = N // 2 = 50.
    outH = outW = 10
    N, r = outH * outW, (outH * outW) // 2

    key = jax.random.PRNGKey(0)
    kx, k1, k2, k3, k4, kx2 = jax.random.split(key, 6)

    # torch Linear stores weight as (out, in); we pass it pre-transposed (in, out).
    w1 = jax.random.normal(k1, (N, r), jnp.float32) * 0.1       # proj1.weight.T
    b1 = jax.random.normal(k2, (r,), jnp.float32) * 0.05        # proj1.bias
    gamma = jnp.ones((r,), jnp.float32)                         # LayerNorm defaults
    beta = jnp.zeros((r,), jnp.float32)
    w2 = jax.random.normal(k3, (r, N), jnp.float32) * 0.1       # proj2.weight.T
    b2 = jax.random.normal(k4, (N,), jnp.float32) * 0.05        # proj2.bias
    params = (w1, b1, gamma, beta, w2, b2)
    # TODO(synk): nn.Dropout(p=0.2) is identity at inference; no dropout RNG applied.

    # demo 1: f32 in / f32 out, single grid step (M = 8 rows)
    B, C, H, W = 2, 4, 16, 16
    x = jax.random.normal(kx, (B, C, H, W), jnp.float32)
    out = jax.block_until_ready(dsa_forward(x, params, outH, outW))
    assert out.shape == (B, C, H, W) and out.dtype == jnp.float32
    ref = jax.block_until_ready(dsa_reference(x, params, outH, outW))
    np.testing.assert_allclose(np.asarray(out), np.asarray(ref), rtol=5e-2, atol=5e-2)

    # demo 2: bf16 streaming (halved HBM I/O), multi-step grid with a partial last block
    B2, C2 = 3, 12                                      # M = 36 rows, tm=16 -> blocks 16/16/4
    x2 = jax.random.normal(kx2, (B2, C2, H, W), jnp.float32).astype(jnp.bfloat16)
    out2 = jax.block_until_ready(dsa_forward(x2, params, outH, outW, tm=16))
    assert out2.shape == (B2, C2, H, W) and out2.dtype == jnp.bfloat16
    ref2 = jax.block_until_ready(dsa_reference(x2.astype(jnp.float32), params, outH, outW))
    np.testing.assert_allclose(np.asarray(out2, dtype=np.float32), np.asarray(ref2),
                               rtol=5e-2, atol=5e-2)

    print("KERNEL_OK")
</pallas_src>

<mosaic_0001>
module attributes {stable_mosaic.version = 11 : i64} {
  func.func @dsa_kernel(%arg0: i32, %arg1: memref<8x256xf32, #tpu.memory_space<vmem>>, %arg2: memref<256x128xbf16, #tpu.memory_space<vmem>>, %arg3: memref<1x128xf32, #tpu.memory_space<vmem>>, %arg4: memref<1x128xf32, #tpu.memory_space<vmem>>, %arg5: memref<1x128xf32, #tpu.memory_space<vmem>>, %arg6: memref<128x128xbf16, #tpu.memory_space<vmem>>, %arg7: memref<1x128xf32, #tpu.memory_space<vmem>>, %arg8: memref<128x256xbf16, #tpu.memory_space<vmem>>, %arg9: memref<8x256xf32, #tpu.memory_space<vmem>>) attributes {dimension_semantics = [#tpu.dimension_semantics<parallel>], iteration_bounds = array<i64: 1>, scalar_prefetch = 0 : i64, scratch_operands = 0 : i64, tpu.core_type = #tpu.core_type<tc>, window_params = [{transform_indices = @transform_0, window_bounds = array<i64: 8, 256>}, {pipeline_mode = #tpu.pipeline_mode<synchronous>, transform_indices = @transform_1, window_bounds = array<i64: 256, 128>}, {pipeline_mode = #tpu.pipeline_mode<synchronous>, transform_indices = @transform_2, window_bounds = array<i64: 1, 128>}, {pipeline_mode = #tpu.pipeline_mode<synchronous>, transform_indices = @transform_3, window_bounds = array<i64: 1, 128>}, {pipeline_mode = #tpu.pipeline_mode<synchronous>, transform_indices = @transform_4, window_bounds = array<i64: 1, 128>}, {pipeline_mode = #tpu.pipeline_mode<synchronous>, transform_indices = @transform_5, window_bounds = array<i64: 128, 128>}, {pipeline_mode = #tpu.pipeline_mode<synchronous>, transform_indices = @transform_6, window_bounds = array<i64: 1, 128>}, {pipeline_mode = #tpu.pipeline_mode<synchronous>, transform_indices = @transform_7, window_bounds = array<i64: 128, 256>}, {transform_indices = @transform_8, window_bounds = array<i64: 8, 256>}]} {
    %c0 = arith.constant 0 : index
    %c0_0 = arith.constant 0 : index
    %0 = vector.load %arg1[%c0, %c0_0] : memref<8x256xf32, #tpu.memory_space<vmem>>, vector<8x256xf32>
    %1 = arith.truncf %0 : vector<8x256xf32> to vector<8x256xbf16>
    %c0_1 = arith.constant 0 : index
    %c0_2 = arith.constant 0 : index
    %2 = vector.load %arg2[%c0_1, %c0_2] : memref<256x128xbf16, #tpu.memory_space<vmem>>, vector<256x128xbf16>
    %cst = arith.constant dense<0.000000e+00> : vector<8x128xf32>
    %3 = tpu.matmul %1, %2, %cst {dimension_numbers = #tpu.dot_dimension_numbers<[1], [0], [0], [1], [0, 0, 1, 1], [], []>} : vector<8x256xbf16>, vector<256x128xbf16>, vector<8x128xf32> -> vector<8x128xf32>
    %c0_3 = arith.constant 0 : index
    %c0_4 = arith.constant 0 : index
    %4 = vector.load %arg3[%c0_3, %c0_4] : memref<1x128xf32, #tpu.memory_space<vmem>>, vector<1x128xf32>
    %5 = vector.broadcast %4 : vector<1x128xf32> to vector<8x128xf32>
    %6 = arith.addf %3, %5 : vector<8x128xf32>
    %cst_5 = arith.constant dense<0.000000e+00> : vector<8xf32>
    %7 = vector.multi_reduction <add>, %6, %cst_5 [1] : vector<8x128xf32> to vector<8xf32>
    %8 = vector.shape_cast %7 : vector<8xf32> to vector<8x1xf32>
    %cst_6 = arith.constant 2.000000e-02 : f32
    %9 = vector.broadcast %cst_6 : f32 to vector<8x1xf32>
    %10 = arith.mulf %8, %9 : vector<8x1xf32>
    %11 = arith.mulf %6, %6 : vector<8x128xf32>
    %cst_7 = arith.constant dense<0.000000e+00> : vector<8xf32>
    %12 = vector.multi_reduction <add>, %11, %cst_7 [1] : vector<8x128xf32> to vector<8xf32>
    %13 = vector.shape_cast %12 : vector<8xf32> to vector<8x1xf32>
    %cst_8 = arith.constant 2.000000e-02 : f32
    %14 = vector.broadcast %cst_8 : f32 to vector<8x1xf32>
    %15 = arith.mulf %13, %14 : vector<8x1xf32>
    %16 = arith.mulf %10, %10 : vector<8x1xf32>
    %17 = arith.subf %15, %16 : vector<8x1xf32>
    %cst_9 = arith.constant 0.000000e+00 : f32
    %18 = vector.broadcast %cst_9 : f32 to vector<8x1xf32>
    %19 = arith.maximumf %17, %18 : vector<8x1xf32>
    %20 = vector.broadcast %10 : vector<8x1xf32> to vector<8x128xf32>
    %21 = arith.subf %6, %20 : vector<8x128xf32>
    %cst_10 = arith.constant 9.99999974E-6 : f32
    %22 = vector.broadcast %cst_10 : f32 to vector<8x1xf32>
    %23 = arith.addf %19, %22 : vector<8x1xf32>
    %24 = math.rsqrt %23 : vector<8x1xf32>
    %25 = vector.broadcast %24 : vector<8x1xf32> to vector<8x128xf32>
    %26 = arith.mulf %21, %25 : vector<8x128xf32>
    %c0_11 = arith.constant 0 : index
    %c0_12 = arith.constant 0 : index
    %27 = vector.load %arg4[%c0_11, %c0_12] : memref<1x128xf32, #tpu.memory_space<vmem>>, vector<1x128xf32>
    %28 = vector.broadcast %27 : vector<1x128xf32> to vector<8x128xf32>
    %29 = arith.mulf %26, %28 : vector<8x128xf32>
    %c0_13 = arith.constant 0 : index
    %c0_14 = arith.constant 0 : index
    %30 = vector.load %arg5[%c0_13, %c0_14] : memref<1x128xf32, #tpu.memory_space<vmem>>, vector<1x128xf32>
    %31 = vector.broadcast %30 : vector<1x128xf32> to vector<8x128xf32>
    %32 = arith.addf %29, %31 : vector<8x128xf32>
    %33 = arith.truncf %32 : vector<8x128xf32> to vector<8x128xbf16>
    %c0_15 = arith.constant 0 : index
    %c0_16 = arith.constant 0 : index
    %34 = vector.load %arg6[%c0_15, %c0_16] : memref<128x128xbf16, #tpu.memory_space<vmem>>, vector<128x128xbf16>
    %cst_17 = arith.constant dense<0.000000e+00> : vector<8x128xf32>
    %35 = tpu.matmul %33, %34, %cst_17 {dimension_numbers = #tpu.dot_dimension_numbers<[1], [0], [0], [1], [0, 0, 1, 1], [], []>} : vector<8x128xbf16>, vector<128x128xbf16>, vector<8x128xf32> -> vector<8x128xf32>
    %c0_18 = arith.constant 0 : index
    %c0_19 = arith.constant 0 : index
    %36 = vector.load %arg7[%c0_18, %c0_19] : memref<1x128xf32, #tpu.memory_space<vmem>>, vector<1x128xf32>
    %37 = vector.broadcast %36 : vector<1x128xf32> to vector<8x128xf32>
    %38 = arith.addf %35, %37 : vector<8x128xf32>
    %cst_20 = arith.constant 5.000000e-01 : f32
    %39 = vector.broadcast %cst_20 : f32 to vector<8x128xf32>
    %40 = arith.mulf %39, %38 : vector<8x128xf32>
    %cst_21 = arith.constant 4.471500e-02 : f32
    %41 = vector.broadcast %cst_21 : f32 to vector<8x128xf32>
    %42 = arith.mulf %41, %38 : vector<8x128xf32>
    %43 = arith.mulf %42, %38 : vector<8x128xf32>
    %44 = arith.mulf %43, %38 : vector<8x128xf32>
    %45 = arith.addf %38, %44 : vector<8x128xf32>
    %cst_22 = arith.constant 0.797884583 : f32
    %46 = vector.broadcast %cst_22 : f32 to vector<8x128xf32>
    %47 = arith.mulf %46, %45 : vector<8x128xf32>
    %48 = math.tanh %47 : vector<8x128xf32>
    %cst_23 = arith.constant 1.000000e+00 : f32
    %49 = vector.broadcast %cst_23 : f32 to vector<8x128xf32>
    %50 = arith.addf %49, %48 : vector<8x128xf32>
    %51 = arith.mulf %40, %50 : vector<8x128xf32>
    %52 = arith.truncf %51 : vector<8x128xf32> to vector<8x128xbf16>
    %c0_24 = arith.constant 0 : index
    %c0_25 = arith.constant 0 : index
    %53 = vector.load %arg8[%c0_24, %c0_25] : memref<128x256xbf16, #tpu.memory_space<vmem>>, vector<128x256xbf16>
    %cst_26 = arith.constant dense<0.000000e+00> : vector<8x256xf32>
    %54 = tpu.matmul %52, %53, %cst_26 {dimension_numbers = #tpu.dot_dimension_numbers<[1], [0], [0], [1], [0, 0, 1, 1], [], []>} : vector<8x128xbf16>, vector<128x256xbf16>, vector<8x256xf32> -> vector<8x256xf32>
    %cst_27 = arith.constant 5.000000e-01 : f32
    %55 = vector.broadcast %cst_27 : f32 to vector<8x256xf32>
    %56 = arith.mulf %55, %54 : vector<8x256xf32>
    %57 = math.tanh %56 : vector<8x256xf32>
    %cst_28 = arith.constant 5.000000e-01 : f32
    %58 = vector.broadcast %cst_28 : f32 to vector<8x256xf32>
    %59 = arith.mulf %58, %57 : vector<8x256xf32>
    %cst_29 = arith.constant 1.500000e+00 : f32
    %60 = vector.broadcast %cst_29 : f32 to vector<8x256xf32>
    %61 = arith.addf %60, %59 : vector<8x256xf32>
    %62 = arith.mulf %0, %61 : vector<8x256xf32>
    %c0_30 = arith.constant 0 : index
    %c0_31 = arith.constant 0 : index
    %63 = vector.load %arg9[%c0_30, %c0_31] : memref<8x256xf32, #tpu.memory_space<vmem>>, vector<8x256xf32>
    tpu.vector_store %arg9[%c0_30, %c0_31], %62 {strides = array<i32>} : memref<8x256xf32, #tpu.memory_space<vmem>>, vector<8x256xf32>,
    return
  }
  func.func @transform_0(%arg0: i32) -> (i32, i32) {
    %c0_i32 = arith.constant 0 : i32
    %c0_i32_0 = arith.constant 0 : i32
    return %arg0, %c0_i32 : i32, i32
  }
  func.func @transform_1(%arg0: i32) -> (i32, i32) {
    %c0_i32 = arith.constant 0 : i32
    %c0_i32_0 = arith.constant 0 : i32
    %c0_i32_1 = arith.constant 0 : i32
    return %c0_i32, %c0_i32_0 : i32, i32
  }
  func.func @transform_2(%arg0: i32) -> (i32, i32) {
    %c0_i32 = arith.constant 0 : i32
    %c0_i32_0 = arith.constant 0 : i32
    %c0_i32_1 = arith.constant 0 : i32
    return %c0_i32, %c0_i32_0 : i32, i32
  }
  func.func @transform_3(%arg0: i32) -> (i32, i32) {
    %c0_i32 = arith.constant 0 : i32
    %c0_i32_0 = arith.constant 0 : i32
    %c0_i32_1 = arith.constant 0 : i32
    return %c0_i32, %c0_i32_0 : i32, i32
  }
  func.func @transform_4(%arg0: i32) -> (i32, i32) {
    %c0_i32 = arith.constant 0 : i32
    %c0_i32_0 = arith.constant 0 : i32
    %c0_i32_1 = arith.constant 0 : i32
    return %c0_i32, %c0_i32_0 : i32, i32
  }
  func.func @transform_5(%arg0: i32) -> (i32, i32) {
    %c0_i32 = arith.constant 0 : i32
    %c0_i32_0 = arith.constant 0 : i32
    %c0_i32_1 = arith.constant 0 : i32
    return %c0_i32, %c0_i32_0 : i32, i32
  }
  func.func @transform_6(%arg0: i32) -> (i32, i32) {
    %c0_i32 = arith.constant 0 : i32
    %c0_i32_0 = arith.constant 0 : i32
    %c0_i32_1 = arith.constant 0 : i32
    return %c0_i32, %c0_i32_0 : i32, i32
  }
  func.func @transform_7(%arg0: i32) -> (i32, i32) {
    %c0_i32 = arith.constant 0 : i32
    %c0_i32_0 = arith.constant 0 : i32
    %c0_i32_1 = arith.constant 0 : i32
    return %c0_i32, %c0_i32_0 : i32, i32
  }
  func.func @transform_8(%arg0: i32) -> (i32, i32) {
    %c0_i32 = arith.constant 0 : i32
    %c0_i32_0 = arith.constant 0 : i32
    return %arg0, %c0_i32 : i32, i32
  }
}

</mosaic_0001>

<bundles_post_ra>
// kernel: tpu_custom_call.1
= control target key start
LH: loop header
LB: loop body
LE: loop exit
PB: predicated region body
PF: predicated region fallthrough
CT: control target
= control target key end

     0   :  { %13 = vsyncpa [#allocation3], 0  ;;  %s946_s0 = inlined_call_operand.hbm [shape: f32[8,256], index: 0, kind: input, shape index: {}]   ;;  %s947_s1 = inlined_call_operand.hbm [shape: bf16[256,128], index: 1, kind: input, shape index: {}]   ;;  %s948_s2 = inlined_call_operand.vmem [shape: f32[1,128], index: 2, kind: input, shape index: {}]   ;;  %s949_s3 = inlined_call_operand.vmem [shape: f32[1,128], index: 3, kind: input, shape index: {}]   ;;  %s950_s4 = inlined_call_operand.vmem [shape: f32[1,128], index: 4, kind: input, shape index: {}]   ;;  %s951_s5 = inlined_call_operand.hbm [shape: bf16[128,128], index: 5, kind: input, shape index: {}]   ;;  %s952_s6 = inlined_call_operand.vmem [shape: f32[1,128], index: 6, kind: input, shape index: {}]   ;;  %s953_s7 = inlined_call_operand.hbm [shape: bf16[128,256], index: 7, kind: input, shape index: {}]   ;;  %s954_s8 = inlined_call_operand.hbm [shape: f32[8,256], index: 8, kind: output, shape index: {}]  }
   0x1   :  { %14 = vsyncpa [#allocation6], 0 }
   0x2   :  { %15 = vsyncpa [#allocation9], 0 }
   0x3   :  { %16 = vsyncpa [#allocation4], 0  ;;  %s852_s27 = smov [#allocation5]  }
   0x4   :  { %s32_s28 = sshll.u32 %s852_s27, 4  ;;  %s33_s28 = int_to_ptr.vmem [resolvable:$true] %s32_s28 }
   0x5   :  { %s752_s29 = scalar_lea.vmem %s33_s28, 2048  ;;  %p757_p1 = scmp.lt.s32.totalorder %s33_s28, %s33_s28 }
   0x6   :  { %p753_p0 = scmp.ne.s32.totalorder %s33_s28, %s752_s29  ;;  %p758_p2 = scmp.lt.s32.totalorder %s752_s29, %s752_s29 }
   0x8   :  { %p759_p3 = por %p758_p2, %p757_p1 }
   0xa   :  { %p760_p4 = pnand %p759_p3, %p753_p0 }
   0xc   :  { %763 = shalt.err (!%p760_p4)
}
   0xd   :  { %s853_s30 = smov 64   ;;  %s854_s9 = smov 4  }
   0xe   :  { %38 = dma.hbm_to_vmem [thread:$0]  %s947_s1, 2048, %s33_s28, [#allocation6], %s853_s30, %s853_s30, %s854_s9  }
   0xf   :  { %s855_s12 = smov [#allocation2]   ;;  %s856_s14 = smov [#allocation7]  }
  0x10   :  { %s23_s13 = sshll.u32 %s855_s12, 4  ;;  %s50_s15 = sshll.u32 %s856_s14, 4  ;;  %s24_s13 = int_to_ptr.vmem [resolvable:$true] %s23_s13  ;;  %s51_s15 = int_to_ptr.vmem [resolvable:$true] %s50_s15 }
  0x11   :  { %s772_s16 = scalar_lea.vmem %s24_s13, 256  ;;  %p777_p6 = scmp.lt.s32.totalorder %s24_s13, %s24_s13 }
  0x12   :  { %p773_p5 = scmp.ne.s32.totalorder %s24_s13, %s772_s16  ;;  %p778_p7 = scmp.lt.s32.totalorder %s772_s16, %s772_s16 }
  0x14   :  { %p779_p8 = por %p778_p7, %p777_p6 }
  0x16   :  { %p780_p9 = pnand %p779_p8, %p773_p5 }
  0x18   :  { %783 = shalt.err (!%p780_p9)
}
  0x19   :  { %26 = dma.hbm_to_vmem [thread:$0]  %s946_s0, 256, %s24_s13, [#allocation3]  }
  0x1a   :  { %s792_s19 = scalar_lea.vmem %s51_s15, 1024  ;;  %p797_p11 = scmp.lt.s32.totalorder %s51_s15, %s51_s15 }
  0x1b   :  { %p793_p10 = scmp.ne.s32.totalorder %s51_s15, %s792_s19  ;;  %p798_p12 = scmp.lt.s32.totalorder %s792_s19, %s792_s19 }
  0x1d   :  { %p799_p13 = por %p798_p12, %p797_p11 }
  0x1f   :  { %p800_p0 = pnand %p799_p13, %p793_p10 }
  0x21   :  { %803 = shalt.err (!%p800_p0)
}
  0x22   :  { %56 = dma.hbm_to_vmem [thread:$0]  %s951_s5, 1024, %s51_s15, [#allocation6], %s853_s30, %s853_s30, %s854_s9  }
  0x23   :  { %s857_s21 = smov [#allocation8]  }
  0x24   :  { %s64_s22 = sshll.u32 %s857_s21, 4  ;;  %s65_s22 = int_to_ptr.vmem [resolvable:$true] %s64_s22 }
  0x25   :  { %s812_s23 = scalar_lea.vmem %s65_s22, 2048  ;;  %p817_p2 = scmp.lt.s32.totalorder %s65_s22, %s65_s22 }
  0x26   :  { %p813_p1 = scmp.ne.s32.totalorder %s65_s22, %s812_s23  ;;  %p818_p3 = scmp.lt.s32.totalorder %s812_s23, %s812_s23 }
  0x28   :  { %p819_p4 = por %p818_p3, %p817_p2 }
  0x2a   :  { %p820_p5 = pnand %p819_p4, %p813_p1 }
  0x2c   :  { %823 = shalt.err (!%p820_p5)
}
  0x2d   :  { %s858_s0 = smov 128   ;;  %s859_s24 = smov 8  }
  0x2e   :  { %70 = dma.hbm_to_vmem [thread:$0]  %s953_s7, 2048, %s65_s22, [#allocation9], %s858_s0, %s858_s0, %s859_s24  }
  0x2f   :  { %844 = dma.done.wait [#allocation3], 256  }
  0x30   :  { %845 = vsyncadd [#allocation3], 4294967040 }
  0x31   :  { %846 = dma.done.wait [#allocation6], 3072  }
  0x32   :  { %847 = vsyncadd [#allocation6], 4294964224 }
  0x33   :  { %848 = dma.done.wait [#allocation9], 2048  }
  0x34   :  { %849 = vsyncadd [#allocation9], 4294965248  ;;  %v688_v0 = vld [vmem:[#allocation5 + $0x78] sm:$0xff]   ;;  %v690_v2 = vld [vmem:[#allocation5 + $0x70] sm:$0xff]   ;;  %v860_v29 = vmov 0.0   ;;  %vm861_vm0 = vmmov 0  }
  0x35   :  { %v689_v1 = vld [vmem:[#allocation5 + $0x38] sm:$0xff]   ;;  %625 = vmatprep.subr.bf16.mxu0 %v688_v0  ;;  %v691_v3 = vld [vmem:[#allocation5 + $0x30] sm:$0xff]   ;;  %v692_v4 = vld [vmem:[#allocation5 + $0x68] sm:$0xff]   ;;  %656 = vmatprep.subr.bf16.mxu1 %v860_v29  ;;  %v862_v0 = vmov 0  }
  0x36   :  { %626 = vmatpush3.bf16.msra.mxu0 %v689_v1  ;;  %v693_v5 = vld [vmem:[#allocation5 + $0x28] sm:$0xff]   ;;  %v694_v6 = vld [vmem:[#allocation5 + $0x60] sm:$0xff]   ;;  %v696_v8 = vld [vmem:[#allocation5 + $0x58] sm:$0xff]   ;;  %672 = vmatprep.mubr.msk.bf16.mxu1 %vm861_vm0, %v860_v29 }
  0x37   :  { %627 = vmatprep.subr.bf16.mxu0 %v690_v2  ;;  %v695_v7 = vld [vmem:[#allocation5 + $0x20] sm:$0xff]   ;;  %v697_v9 = vld [vmem:[#allocation5 + $0x18] sm:$0xff]   ;;  %v698_v10 = vld [vmem:[#allocation5 + $0x50] sm:$0xff]  }
  0x38   :  { %v921_v11 = vld [vmem:[#allocation2 + $0x8] sm:$0xff]  ;;  %v699_v12 = vld [vmem:[#allocation5 + $0x10] sm:$0xff]   ;;  %v700_v14 = vld [vmem:[#allocation5 + $0x48] sm:$0xff]  }
  0x39   :  { %v87_v13 = vpack.c.bf16 %v921_v11, %v921_v11  ;;  %v701_v15 = vld [vmem:[#allocation5 + $0x8] sm:$0xff]   ;;  %v702_v16 = vld [vmem:[#allocation5 + $0x40] sm:$0xff]   ;;  %v925_v18 = vld [vmem:[#allocation2] sm:$0xff] }
  0x3a   :  { %628 = vmatpush3.bf16.msra.mxu0 %v691_v3  ;;  %v703_v17 = vld [vmem:[#allocation5] sm:$0xff]   ;;  %v86_v19 = vpack.c.bf16 %v925_v18, %v925_v18  ;;  %v581_v21 = vld [vmem:[%s948_s2] ss:$0 sm:$0xff]  ;;  %v704_v28 = vld [vmem:[#allocation7 + $0x38] sm:$0xff]  }
  0x3b   :  { %629 = vmatprep.subr.bf16.mxu0 %v692_v4  ;;  %255 = vmatprep.mubr.bf16.mxu0 %v87_v13  ;;  %v705_v30 = vld [vmem:[#allocation7 + $0x30] sm:$0xff]   ;;  %v706_v31 = vld [vmem:[#allocation7 + $0x28] sm:$0xff]   ;;  %v707_v32 = vld [vmem:[#allocation7 + $0x20] sm:$0xff]  }
  0x3c   :  { %657 = vmatpush3.bf16.msra.mxu1 %v704_v28  ;;  %v708_v33 = vld [vmem:[#allocation7 + $0x18] sm:$0xff]   ;;  %v709_v34 = vld [vmem:[#allocation7 + $0x10] sm:$0xff]   ;;  %v710_v35 = vld [vmem:[#allocation7 + $0x8] sm:$0xff]  }
  0x3d   :  { %658 = vmatprep.subr.bf16.mxu1 %v860_v29  ;;  %v711_v36 = vld [vmem:[#allocation7] sm:$0xff]   ;;  %v598_v47 = vld [vmem:[%s949_s3] ss:$0 sm:$0xff]  ;;  %v714_v53 = vld [vmem:[#allocation8 + $0x74] ss:$8 sps:$4 sm:$0xff]  }
  0x3e   :  { %630 = vmatpush3.bf16.msra.mxu0 %v693_v5  ;;  %v599_v49 = vld [vmem:[%s950_s4] ss:$0 sm:$0xff]  ;;  %v717_v55 = vld [vmem:[#allocation8 + $0x64] ss:$8 sps:$4 sm:$0xff]   ;;  %v715_v56 = vld [vmem:[#allocation8 + $0x60] ss:$8 sps:$4 sm:$0xff]  }
  0x3f   :  { %631 = vmatprep.subr.bf16.mxu0 %v694_v6  ;;  %v712_v54 = vld [vmem:[#allocation8 + $0x70] ss:$8 sps:$4 sm:$0xff]   ;;  %v720_v57 = vld [vmem:[#allocation8 + $0x54] ss:$8 sps:$4 sm:$0xff]   ;;  %v721_v59 = vld [vmem:[#allocation8 + $0x40] ss:$8 sps:$4 sm:$0xff]  }
  0x40   :  { %659 = vmatpush3.bf16.msra.mxu1 %v705_v30  ;;  %v718_v58 = vld [vmem:[#allocation8 + $0x50] ss:$8 sps:$4 sm:$0xff]   ;;  %v723_v60 = vld [vmem:[#allocation8 + $0x44] ss:$8 sps:$4 sm:$0xff]   ;;  %v726_v61 = vld [vmem:[#allocation8 + $0x34] ss:$8 sps:$4 sm:$0xff]  }
  0x41   :  { %660 = vmatprep.subr.bf16.mxu1 %v860_v29  ;;  %v724_v62 = vld [vmem:[#allocation8 + $0x30] ss:$8 sps:$4 sm:$0xff]   ;;  %v729_v63 = vld [vmem:[#allocation8 + $0x24] ss:$8 sps:$4 sm:$0xff]   ;;  %v727_v1 = vld [vmem:[#allocation8 + $0x20] ss:$8 sps:$4 sm:$0xff]  }
  0x42   :  { %632 = vmatpush3.bf16.msra.mxu0 %v695_v7  ;;  %v732_v2 = vld [vmem:[#allocation8 + $0x14] ss:$8 sps:$4 sm:$0xff]   ;;  %v730_v3 = vld [vmem:[#allocation8 + $0x10] ss:$8 sps:$4 sm:$0xff]   ;;  %v735_v4 = vld [vmem:[#allocation8 + $0x4] ss:$8 sps:$4 sm:$0xff]  }
  0x43   :  { %633 = vmatprep.subr.bf16.mxu0 %v696_v8  ;;  %v733_v5 = vld [vmem:[#allocation8] ss:$8 sps:$4 sm:$0xff]   ;;  %v600_v6 = vld [vmem:[%s952_s6] ss:$0 sm:$0xff]  ;;  %s863_s6 = smov [#allocation10]  }
  0x44   :  { %661 = vmatpush3.bf16.msra.mxu1 %v706_v31  ;;  %s570_s30 = sshll.u32 %s863_s6, 4  ;;  %s571_s30 = int_to_ptr.vmem [resolvable:$true] %s570_s30 }
  0x45   :  { %662 = vmatprep.subr.bf16.mxu1 %v860_v29  ;;  %s824_s9 = scalar_lea.vmem %s571_s30, 256  ;;  %p829_p7 = scmp.lt.s32.totalorder %s571_s30, %s571_s30 }
  0x46   :  { %634 = vmatpush3.bf16.msra.mxu0 %v697_v9  ;;  %p825_p6 = scmp.ne.s32.totalorder %s571_s30, %s824_s9  ;;  %p830_p8 = scmp.lt.s32.totalorder %s824_s9, %s824_s9 }
  0x47   :  { %635 = vmatprep.subr.bf16.mxu0 %v698_v10 }
  0x48   :  { %663 = vmatpush3.bf16.msra.mxu1 %v707_v32  ;;  %p831_p9 = por %p830_p8, %p829_p7 }
  0x49   :  { %664 = vmatprep.subr.bf16.mxu1 %v860_v29 }
  0x4a   :  { %636 = vmatpush3.bf16.msra.mxu0 %v699_v12  ;;  %p832_p10 = pnand %p831_p9, %p825_p6 }
  0x4b   :  { %637 = vmatprep.subr.bf16.mxu0 %v700_v14 }
  0x4c   :  { %665 = vmatpush3.bf16.msra.mxu1 %v708_v33 }
  0x4d   :  { %666 = vmatprep.subr.bf16.mxu1 %v860_v29 }
  0x4e   :  { %638 = vmatpush3.bf16.msra.mxu0 %v701_v15 }
  0x4f   :  { %639 = vmatprep.subr.bf16.mxu0 %v702_v16 }
  0x50   :  { %667 = vmatpush3.bf16.msra.mxu1 %v709_v34 }
  0x51   :  { %668 = vmatprep.subr.bf16.mxu1 %v860_v29 }
  0x52   :  { %640 = vmatpush3.bf16.msra.mxu0 %v703_v17 }
  0x53   :  { %511 = vmatprep.subr.bf16.mxu0 %v714_v53 }
  0x54   :  { %669 = vmatpush3.bf16.msra.mxu1 %v710_v35 }
  0x55   :  { %256 = vmatmul.mubr.bf16.vlgmr.msra.gmra.mxu0 %v86_v19  ;;  %670 = vmatprep.subr.bf16.mxu1 %v860_v29 }
  0x56   :  { %512 = vmatpush1.bf16.msra.mxu0 %v712_v54  ;;  %543 = vmatprep.mubr.bf16.mxu0 %v862_v0 }
  0x57   :  { %513 = vmatprep.subr.bf16.mxu0 %v717_v55 }
  0x58   :  { %671 = vmatpush3.bf16.msra.mxu1 %v711_v36 }
  0x5a   :  { %514 = vmatpush1.bf16.msra.mxu0 %v715_v56 }
  0x5b   :  { %515 = vmatprep.subr.bf16.mxu0 %v720_v57 }
  0x5e   :  { %516 = vmatpush1.bf16.msra.mxu0 %v718_v58 }
  0x5f   :  { %517 = vmatprep.subr.bf16.mxu0 %v723_v60 }
  0x62   :  { %518 = vmatpush1.bf16.msra.mxu0 %v721_v59 }
  0x63   :  { %519 = vmatprep.subr.bf16.mxu0 %v726_v61 }
  0x66   :  { %520 = vmatpush1.bf16.msra.mxu0 %v724_v62 }
  0x67   :  { %521 = vmatprep.subr.bf16.mxu0 %v729_v63 }
  0x6a   :  { %522 = vmatpush1.bf16.msra.mxu0 %v727_v1 }
  0x6b   :  { %523 = vmatprep.subr.bf16.mxu0 %v732_v2 }
  0x6e   :  { %524 = vmatpush1.bf16.msra.mxu0 %v730_v3 }
  0x6f   :  { %525 = vmatprep.subr.bf16.mxu0 %v735_v4 }
  0x72   :  { %526 = vmatpush1.bf16.msra.mxu0 %v733_v5 }
 0x115   :  { %v641_v20 = vpop.f32.mrf.mxu0 }
 0x117   :  { %v642_v22 = vpop.f32.mrf.mxu0 }
 0x118   :  { %v643_v23 = vadd.f32 %v642_v22, %v641_v20 }
 0x119   :  { %v644_v24 = vpop.f32.mrf.mxu0 }
 0x11a   :  { %v258_v25 = vadd.f32 %v643_v23, %v581_v21 }
 0x11b   :  { %v645_v26 = vpop.f32.mrf.mxu0 }
 0x11c   :  { %263 = vadd.xlane.f32.xlu0 %v258_v25  ;;  %v266_v27 = vmul.f32 %v258_v25, %v258_v25 }
 0x120   :  { %267 = vadd.xlane.f32.xlu0 %v266_v27 }
 0x1a5   :  { %v264_v37 = vpop.xlane.xlu0 %263 }
 0x1a6   :  { %v265_v38 = vmul.f32 0.02, %v264_v37 }
 0x1a8   :  { %v270_v40 = vmul.f32 %v265_v38, %v265_v38  ;;  %v273_v45 = vsub.f32 %v258_v25, %v265_v38 }
 0x1a9   :  { %v268_v39 = vpop.xlane.xlu0 %267 }
 0x1aa   :  { %v269_v41 = vmul.f32 0.02, %v268_v39 }
 0x1ac   :  { %v271_v42 = vsub.f32 %v269_v41, %v270_v40 }
 0x1ae   :  { %v272_v43 = vmax.f32 %v271_v42, 0.0 }
 0x1b0   :  { %v274_v44 = vadd.f32 1e-05, %v272_v43 }
 0x1b2   :  { %736 = vrsqrt.f32 %v274_v44 }
 0x1bf   :  { %v737_v46 = vpop.eup %736 }
 0x1c0   :  { %v276_v48 = vmul.f32 %v737_v46, %v273_v45 }
 0x1c2   :  { %v284_v50 = vmul.f32 %v598_v47, %v276_v48 }
 0x1c4   :  { %v292_v51 = vadd.f32 %v599_v49, %v284_v50 }
 0x1c6   :  { %v293_v52 = vpack.c.bf16 %v292_v51, %v292_v51 }
 0x1c8   :  { %673 = vmatmul.mubr.bf16.vlgmr.msra.gmra.mxu1 %v293_v52 }
 0x288   :  { %v399_v7 = vpop.f32.mrf.mxu1 }
 0x289   :  { %v400_v8 = vadd.f32 %v600_v6, %v399_v7 }
 0x28a   :  { %v674_v9 = vpop.f32.mrf.mxu1 }
 0x28b   :  { %v406_v10 = vmul.f32 0.044715, %v400_v8  ;;  %v405_v20 = vmul.f32 0.5, %v400_v8 }
 0x28c   :  { %v402_v12 = vpop.f32.mrf.mxu1 }
 0x28d   :  { %v407_v13 = vmul.f32 %v406_v10, %v400_v8 }
 0x28e   :  { %v675_v14 = vpop.f32.mrf.mxu1 }
 0x28f   :  { %v408_v15 = vmul.f32 %v407_v13, %v400_v8 }
 0x291   :  { %v409_v16 = vadd.f32 %v408_v15, %v400_v8 }
 0x293   :  { %v410_v17 = vmul.f32 0.7978846, %v409_v16 }
 0x295   :  { %738 = vtanh.f32 %v410_v17 }
 0x2a2   :  { %v739_v19 = vpop.eup %738 }
 0x2a3   :  { %v412_v21 = vadd.f32 1.0, %v739_v19 }
 0x2a5   :  { %v413_v22 = vmul.f32 %v412_v21, %v405_v20 }
 0x2a7   :  { %v414_v23 = vpack.c.bf16 %v413_v22, %v413_v22 }
 0x2a9   :  { %544 = vmatmul.mubr.bf16.vlgmr.msra.gmra.mxu0 %v414_v23 }
 0x369   :  { %v545_v24 = vpop.f32.mrf.mxu0 }
 0x36a   :  { %v552_v25 = vmul.f32 0.5, %v545_v24 }
 0x36b   :  { %v547_v26 = vpop.f32.mrf.mxu0 }
 0x36c   :  { %740 = vtanh.f32 %v552_v25  ;;  %v553_v27 = vmul.f32 0.5, %v547_v26 }
 0x36d   :  { %v549_v28 = vpop.f32.mrf.mxu0 }
 0x36e   :  { %742 = vtanh.f32 %v553_v27 }
 0x36f   :  { %v550_v29 = vpop.f32.mrf.mxu0 }
 0x379   :  { %v741_v30 = vpop.eup %740 }
 0x37a   :  { %v556_v31 = vmul.f32 0.5, %v741_v30 }
 0x37b   :  { %v743_v32 = vpop.eup %742 }
 0x37c   :  { %v558_v33 = vadd.f32 1.5, %v556_v31  ;;  %v557_v34 = vmul.f32 0.5, %v743_v32 }
 0x37e   :  { %v559_v35 = vadd.f32 1.5, %v557_v34  ;;  %v560_v36 = vmul.f32 %v558_v33, %v925_v18 }
 0x380   :  { %v561_v37 = vmul.f32 %v559_v35, %v921_v11  ;;  %562 = vst [vmem:[#allocation10] sm:$0xff] %v560_v36 }
 0x382   :  { %563 = vst [vmem:[#allocation10 + $0x8] sm:$0xff] %v561_v37 }
 0x383   :  { %835 = shalt.err (!%p832_p10)
}
 0x384   :  { %573 = dma.vmem_to_hbm [thread:$0]  %s571_s30, 256, %s954_s8, [#allocation4]  }
 0x385   :  { %850 = dma.done.wait [#allocation4], 256  }
 0x386   :  { %851 = vsyncadd [#allocation4], 4294967040 }
 0x387   :  { %577 = vsyncpa [#allocation3], 1 }
 0x388   :  { %578 = vsyncpa [#allocation6], 1 }
 0x389   :  { %579 = vsyncpa [#allocation9], 1 }
 0x38a   :  { %580 = vsyncpa [#allocation4], 1 }

</bundles_post_ra>
